<compile_context>
chip_gen: v5e
topology: v5e:2x2
jax: 0.10.0
libtpu: 0.0.40
codegen_flags: <defaults>
</compile_context>

<pallas_src>
import functools

import jax
import jax.numpy as jnp
import numpy as np
from jax import lax
from jax.experimental import pallas as pl
from jax.experimental.pallas import tpu as pltpu


def _round_up(a, b):
    return (a + b - 1) // b * b


# ----------------------------------------------------------------------------
# Flow kernel: one grid step per row tile; the whole T-transform chain runs
# inside the body (unrolled), carrying the state in f32.
#   xT_ref   : (Dp,  tileM)        feature-major current state (rows on lanes)
#   ctxm_ref : (Cp1, tileM)        feature-major context; row `mask_row` holds
#                                  node_mask and doubles as the bias carrier
#   wx_ref   : (T, 2Dp, Dp)        fused x-weights (rows 0:Dp shift head,
#                                  rows Dp:2Dp log_scale head), resident
#   wc_ref   : (T, 2Dp, Cp1)       fused context weights + bias column, resident
#   yT_ref   : (Dp,  tileM)        output state (caller dtype)
# ----------------------------------------------------------------------------
def _flow_kernel(xT_ref, ctxm_ref, wx_ref, wc_ref, yT_ref, *, d_pad, mask_row):
    x = xT_ref[...].astype(jnp.float32)            # (Dp, tileM)
    ctx = ctxm_ref[...].astype(jnp.float32)        # (Cp1, tileM)
    tile_m = x.shape[1]

    # Hoisted out of the transform loop (JAX does not CSE broadcasts).
    mask_b = jnp.broadcast_to(ctx[mask_row:mask_row + 1, :], (d_pad, tile_m))
    half_mask = 0.5 * mask_b

    num_t = wx_ref.shape[0]

    def body(t, x):
        # One fused MXU call pair per transform: rows [0:Dp] = shift
        # pre-activation, rows [Dp:2Dp] = log_scale pre-activation.  The
        # context/bias term does not depend on the carried state, so it is
        # off the serial x-chain.
        pre = (jnp.dot(wx_ref[t], x, preferred_element_type=jnp.float32)
               + jnp.dot(wc_ref[t], ctx, preferred_element_type=jnp.float32))
        shift = pre[:d_pad] * mask_b
        log_scale = jnp.tanh(pre[d_pad:]) * half_mask    # bounded, masked
        return x * jnp.exp(log_scale) + shift

    x = lax.fori_loop(0, num_t, body, x, unroll=True)
    yT_ref[...] = x.astype(yT_ref.dtype)


def conditional_flow_forward(x, node_mask, edge_mask, context, params,
                             *, tile_m=None):
    """Matches ConditionalFlow.forward: applies context_net (if present), then
    the chain of transformations; ldj is discarded by the module, so it is not
    computed. Returns x."""
    del edge_mask  # unused by the synthetic coupling transforms

    # context_net: one small einsum -> plain XLA (no dedicated kernel launch).
    if params.get("Wc") is not None:
        context = jnp.einsum("bni,io->bno", context, params["Wc"]) + params["bc"]

    B, N, D = x.shape
    C = context.shape[-1]
    W, b = params["W"], params["b"]              # (T, D+C, 2D), (T, 1, 2D)
    T = W.shape[0]

    M = B * N
    Dp = _round_up(D, 8)                         # features -> full sublane group
    Cp1 = _round_up(C + 1, 8)                    # context features + bias row

    if tile_m is None:
        m128 = _round_up(M, 128)
        # Big lane-dense tiles amortize the ~0.35us grid-step overhead; cap at
        # 1024 so carried state + temporaries stay inside the 64-vreg file,
        # and split into >= 2 tiles when possible so both v7x TensorCores
        # get work (no effect on v5e/v6e beyond smaller-but-still-big tiles).
        tile_m = min(1024, m128)
        if m128 > 128 and m128 // tile_m < 2:
            tile_m = _round_up(pl.cdiv(m128, 2), 128)
    Mp = _round_up(M, tile_m)

    f32 = jnp.float32

    # -------- tiny resident weights (fused heads, transposed, zero-padded) --
    # Zero-padding invariant: padded feature rows get zero weights / zero
    # context, so log_scale = 0 (scale 1) and shift = 0 -> padded rows and
    # padded lane columns stay exactly 0 through the chain.
    WxT = jnp.swapaxes(W[:, :D, :], 1, 2)        # (T, 2D, D)  x-part
    WcT = jnp.swapaxes(W[:, D:, :], 1, 2)        # (T, 2D, C)  ctx-part
    bT = b[:, 0, :]                              # (T, 2D)

    wx = jnp.zeros((T, 2 * Dp, Dp), f32)
    wx = wx.at[:, :D, :D].set(WxT[:, :D, :].astype(f32))          # shift head
    wx = wx.at[:, Dp:Dp + D, :D].set(WxT[:, D:, :].astype(f32))   # log_scale head

    wc = jnp.zeros((T, 2 * Dp, Cp1), f32)
    wc = wc.at[:, :D, :C].set(WcT[:, :D, :].astype(f32))
    wc = wc.at[:, Dp:Dp + D, :C].set(WcT[:, D:, :].astype(f32))
    # Bias rides the context matmul via the mask row (column C).
    wc = wc.at[:, :D, C].set(bT[:, :D].astype(f32))
    wc = wc.at[:, Dp:Dp + D, C].set(bT[:, D:].astype(f32))

    # -------- feature-major, zero-padded data slabs ------------------------
    xT = jnp.zeros((Dp, Mp), x.dtype).at[:D, :M].set(x.reshape(M, D).T)
    ctxm = jnp.zeros((Cp1, Mp), f32)
    ctxm = ctxm.at[:C, :M].set(context.reshape(M, C).T.astype(f32))
    ctxm = ctxm.at[C, :M].set(node_mask.reshape(M).astype(f32))   # mask / bias row

    kernel = functools.partial(_flow_kernel, d_pad=Dp, mask_row=C)

    yT = pl.pallas_call(
        kernel,
        out_shape=jax.ShapeDtypeStruct((Dp, Mp), x.dtype),
        grid=(Mp // tile_m,),
        in_specs=[
            pl.BlockSpec((Dp, tile_m), lambda m: (0, m)),
            pl.BlockSpec((Cp1, tile_m), lambda m: (0, m)),
            pl.BlockSpec((T, 2 * Dp, Dp), lambda m: (0, 0, 0)),
            pl.BlockSpec((T, 2 * Dp, Cp1), lambda m: (0, 0, 0)),
        ],
        out_specs=pl.BlockSpec((Dp, tile_m), lambda m: (0, m)),
        compiler_params=pltpu.CompilerParams(
            dimension_semantics=("parallel",),
            vmem_limit_bytes=32 * 1024 * 1024),
    )(xT, ctxm, wx, wc)

    return yT[:D, :M].T.reshape(B, N, D)


# ----------------------------------------------------------------------------
# Pure-JAX reference for verification (mirrors the PyTorch forward with the
# same synthetic coupling transforms; ldj computed then discarded).
# ----------------------------------------------------------------------------
def _ref_forward(x, node_mask, context, params):
    D = x.shape[-1]
    if params.get("Wc") is not None:
        context = jnp.einsum("bni,io->bno", context, params["Wc"]) + params["bc"]
    y = x
    ldj = jnp.zeros((x.shape[0],), jnp.float32)
    for t in range(params["W"].shape[0]):
        h = jnp.concatenate([y, context], axis=-1)
        out = jnp.einsum("bni,io->bno", h, params["W"][t]) + params["b"][t]
        shift = out[..., :D] * node_mask
        log_scale = jnp.tanh(out[..., D:]) * 0.5 * node_mask
        y = y * jnp.exp(log_scale) + shift
        ldj = ldj + jnp.sum(log_scale, axis=(1, 2))
    return y, ldj


if __name__ == "__main__":
    # Small shapes: batch=2, nodes=8, dims=3, raw-context=4, context=8, 3 transforms.
    B, N, D, Cin, C, T = 2, 8, 3, 4, 8, 3

    key = jax.random.PRNGKey(0)
    kx, kc, km, kwc, kbc, kw, kb = jax.random.split(key, 7)

    x = jax.random.normal(kx, (B, N, D), jnp.float32)
    context_raw = jax.random.normal(kc, (B, N, Cin), jnp.float32)
    # node_mask: mask out the last two nodes of batch element 1.
    node_mask = jnp.ones((B, N, 1), jnp.float32)
    node_mask = node_mask.at[1, N - 2:, 0].set(0.0)
    edge_mask = jnp.ones((B * N * N, 1), jnp.float32)  # unused, API parity

    params = {
        "Wc": 0.2 * jax.random.normal(kwc, (Cin, C), jnp.float32),
        "bc": 0.1 * jax.random.normal(kbc, (1, 1, C), jnp.float32),
        "W": 0.2 * jax.random.normal(kw, (T, D + C, 2 * D), jnp.float32),
        "b": 0.1 * jax.random.normal(kb, (T, 1, 2 * D), jnp.float32),
    }

    y = conditional_flow_forward(x, node_mask, edge_mask, context_raw, params)
    y = jax.block_until_ready(y)

    y_ref, _ = _ref_forward(x, node_mask, context_raw, params)
    np.testing.assert_allclose(np.asarray(y), np.asarray(y_ref),
                               rtol=1e-5, atol=1e-5)

    print("KERNEL_OK")
</pallas_src>

<mosaic_0001>
module attributes {stable_mosaic.version = 11 : i64} {
  func.func @_flow_kernel(%arg0: i32, %arg1: memref<8x128xf32, #tpu.memory_space<vmem>>, %arg2: memref<16x128xf32, #tpu.memory_space<vmem>>, %arg3: memref<3x16x8xf32, #tpu.memory_space<vmem>>, %arg4: memref<3x16x16xf32, #tpu.memory_space<vmem>>, %arg5: memref<8x128xf32, #tpu.memory_space<vmem>>) attributes {dimension_semantics = [#tpu.dimension_semantics<parallel>], iteration_bounds = array<i64: 1>, scalar_prefetch = 0 : i64, scratch_operands = 0 : i64, tpu.core_type = #tpu.core_type<tc>, window_params = [{transform_indices = @transform_0, window_bounds = array<i64: 8, 128>}, {transform_indices = @transform_1, window_bounds = array<i64: 16, 128>}, {pipeline_mode = #tpu.pipeline_mode<synchronous>, transform_indices = @transform_2, window_bounds = array<i64: 3, 16, 8>}, {pipeline_mode = #tpu.pipeline_mode<synchronous>, transform_indices = @transform_3, window_bounds = array<i64: 3, 16, 16>}, {transform_indices = @transform_4, window_bounds = array<i64: 8, 128>}]} {
    %c0 = arith.constant 0 : index
    %c0_0 = arith.constant 0 : index
    %0 = vector.load %arg1[%c0, %c0_0] : memref<8x128xf32, #tpu.memory_space<vmem>>, vector<8x128xf32>
    %c0_1 = arith.constant 0 : index
    %c0_2 = arith.constant 0 : index
    %1 = vector.load %arg2[%c0_1, %c0_2] : memref<16x128xf32, #tpu.memory_space<vmem>>, vector<16x128xf32>
    %2 = vector.extract_strided_slice %1 {offsets = [8, 0], sizes = [1, 128], strides = [1, 1]} : vector<16x128xf32> to vector<1x128xf32>
    %3 = vector.shape_cast %2 : vector<1x128xf32> to vector<1x128xf32>
    %4 = vector.broadcast %3 : vector<1x128xf32> to vector<8x128xf32>
    %cst = arith.constant 5.000000e-01 : f32
    %5 = vector.broadcast %cst : f32 to vector<8x128xf32>
    %6 = arith.mulf %5, %4 : vector<8x128xf32>
    %c0_i32 = arith.constant 0 : i32
    %7 = arith.index_cast %c0_i32 : i32 to index
    %c0_3 = arith.constant 0 : index
    %c0_4 = arith.constant 0 : index
    %8 = vector.load %arg3[%7, %c0_3, %c0_4] : memref<3x16x8xf32, #tpu.memory_space<vmem>>, vector<1x16x8xf32>
    %9 = vector.shape_cast %8 : vector<1x16x8xf32> to vector<16x8xf32>
    %cst_5 = arith.constant dense<0.000000e+00> : vector<16x128xf32>
    %10 = tpu.matmul %9, %0, %cst_5 {dimension_numbers = #tpu.dot_dimension_numbers<[1], [0], [0], [1], [0, 0, 1, 1], [], []>} : vector<16x8xf32>, vector<8x128xf32>, vector<16x128xf32> -> vector<16x128xf32>
    %11 = arith.index_cast %c0_i32 : i32 to index
    %c0_6 = arith.constant 0 : index
    %c0_7 = arith.constant 0 : index
    %12 = vector.load %arg4[%11, %c0_6, %c0_7] : memref<3x16x16xf32, #tpu.memory_space<vmem>>, vector<1x16x16xf32>
    %13 = vector.shape_cast %12 : vector<1x16x16xf32> to vector<16x16xf32>
    %cst_8 = arith.constant dense<0.000000e+00> : vector<16x128xf32>
    %14 = tpu.matmul %13, %1, %cst_8 {dimension_numbers = #tpu.dot_dimension_numbers<[1], [0], [0], [1], [0, 0, 1, 1], [], []>} : vector<16x16xf32>, vector<16x128xf32>, vector<16x128xf32> -> vector<16x128xf32>
    %15 = arith.addf %10, %14 : vector<16x128xf32>
    %16 = vector.extract_strided_slice %15 {offsets = [0, 0], sizes = [8, 128], strides = [1, 1]} : vector<16x128xf32> to vector<8x128xf32>
    %17 = arith.mulf %16, %4 : vector<8x128xf32>
    %18 = vector.extract_strided_slice %15 {offsets = [8, 0], sizes = [8, 128], strides = [1, 1]} : vector<16x128xf32> to vector<8x128xf32>
    %19 = math.tanh %18 : vector<8x128xf32>
    %20 = arith.mulf %19, %6 : vector<8x128xf32>
    %21 = math.exp %20 : vector<8x128xf32>
    %22 = arith.mulf %0, %21 : vector<8x128xf32>
    %23 = arith.addf %22, %17 : vector<8x128xf32>
    %c1_i32 = arith.constant 1 : i32
    %24 = arith.index_cast %c1_i32 : i32 to index
    %c0_9 = arith.constant 0 : index
    %c0_10 = arith.constant 0 : index
    %25 = vector.load %arg3[%24, %c0_9, %c0_10] : memref<3x16x8xf32, #tpu.memory_space<vmem>>, vector<1x16x8xf32>
    %26 = vector.shape_cast %25 : vector<1x16x8xf32> to vector<16x8xf32>
    %cst_11 = arith.constant dense<0.000000e+00> : vector<16x128xf32>
    %27 = tpu.matmul %26, %23, %cst_11 {dimension_numbers = #tpu.dot_dimension_numbers<[1], [0], [0], [1], [0, 0, 1, 1], [], []>} : vector<16x8xf32>, vector<8x128xf32>, vector<16x128xf32> -> vector<16x128xf32>
    %28 = arith.index_cast %c1_i32 : i32 to index
    %c0_12 = arith.constant 0 : index
    %c0_13 = arith.constant 0 : index
    %29 = vector.load %arg4[%28, %c0_12, %c0_13] : memref<3x16x16xf32, #tpu.memory_space<vmem>>, vector<1x16x16xf32>
    %30 = vector.shape_cast %29 : vector<1x16x16xf32> to vector<16x16xf32>
    %cst_14 = arith.constant dense<0.000000e+00> : vector<16x128xf32>
    %31 = tpu.matmul %30, %1, %cst_14 {dimension_numbers = #tpu.dot_dimension_numbers<[1], [0], [0], [1], [0, 0, 1, 1], [], []>} : vector<16x16xf32>, vector<16x128xf32>, vector<16x128xf32> -> vector<16x128xf32>
    %32 = arith.addf %27, %31 : vector<16x128xf32>
    %33 = vector.extract_strided_slice %32 {offsets = [0, 0], sizes = [8, 128], strides = [1, 1]} : vector<16x128xf32> to vector<8x128xf32>
    %34 = arith.mulf %33, %4 : vector<8x128xf32>
    %35 = vector.extract_strided_slice %32 {offsets = [8, 0], sizes = [8, 128], strides = [1, 1]} : vector<16x128xf32> to vector<8x128xf32>
    %36 = math.tanh %35 : vector<8x128xf32>
    %37 = arith.mulf %36, %6 : vector<8x128xf32>
    %38 = math.exp %37 : vector<8x128xf32>
    %39 = arith.mulf %23, %38 : vector<8x128xf32>
    %40 = arith.addf %39, %34 : vector<8x128xf32>
    %c2_i32 = arith.constant 2 : i32
    %41 = arith.index_cast %c2_i32 : i32 to index
    %c0_15 = arith.constant 0 : index
    %c0_16 = arith.constant 0 : index
    %42 = vector.load %arg3[%41, %c0_15, %c0_16] : memref<3x16x8xf32, #tpu.memory_space<vmem>>, vector<1x16x8xf32>
    %43 = vector.shape_cast %42 : vector<1x16x8xf32> to vector<16x8xf32>
    %cst_17 = arith.constant dense<0.000000e+00> : vector<16x128xf32>
    %44 = tpu.matmul %43, %40, %cst_17 {dimension_numbers = #tpu.dot_dimension_numbers<[1], [0], [0], [1], [0, 0, 1, 1], [], []>} : vector<16x8xf32>, vector<8x128xf32>, vector<16x128xf32> -> vector<16x128xf32>
    %45 = arith.index_cast %c2_i32 : i32 to index
    %c0_18 = arith.constant 0 : index
    %c0_19 = arith.constant 0 : index
    %46 = vector.load %arg4[%45, %c0_18, %c0_19] : memref<3x16x16xf32, #tpu.memory_space<vmem>>, vector<1x16x16xf32>
    %47 = vector.shape_cast %46 : vector<1x16x16xf32> to vector<16x16xf32>
    %cst_20 = arith.constant dense<0.000000e+00> : vector<16x128xf32>
    %48 = tpu.matmul %47, %1, %cst_20 {dimension_numbers = #tpu.dot_dimension_numbers<[1], [0], [0], [1], [0, 0, 1, 1], [], []>} : vector<16x16xf32>, vector<16x128xf32>, vector<16x128xf32> -> vector<16x128xf32>
    %49 = arith.addf %44, %48 : vector<16x128xf32>
    %50 = vector.extract_strided_slice %49 {offsets = [0, 0], sizes = [8, 128], strides = [1, 1]} : vector<16x128xf32> to vector<8x128xf32>
    %51 = arith.mulf %50, %4 : vector<8x128xf32>
    %52 = vector.extract_strided_slice %49 {offsets = [8, 0], sizes = [8, 128], strides = [1, 1]} : vector<16x128xf32> to vector<8x128xf32>
    %53 = math.tanh %52 : vector<8x128xf32>
    %54 = arith.mulf %53, %6 : vector<8x128xf32>
    %55 = math.exp %54 : vector<8x128xf32>
    %56 = arith.mulf %40, %55 : vector<8x128xf32>
    %57 = arith.addf %56, %51 : vector<8x128xf32>
    %c3_i32 = arith.constant 3 : i32
    %c0_21 = arith.constant 0 : index
    %c0_22 = arith.constant 0 : index
    %58 = vector.load %arg5[%c0_21, %c0_22] : memref<8x128xf32, #tpu.memory_space<vmem>>, vector<8x128xf32>
    tpu.vector_store %arg5[%c0_21, %c0_22], %57 {strides = array<i32>} : memref<8x128xf32, #tpu.memory_space<vmem>>, vector<8x128xf32>,
    return
  }
  func.func @transform_0(%arg0: i32) -> (i32, i32) {
    %c0_i32 = arith.constant 0 : i32
    %c0_i32_0 = arith.constant 0 : i32
    return %c0_i32, %arg0 : i32, i32
  }
  func.func @transform_1(%arg0: i32) -> (i32, i32) {
    %c0_i32 = arith.constant 0 : i32
    %c0_i32_0 = arith.constant 0 : i32
    return %c0_i32, %arg0 : i32, i32
  }
  func.func @transform_2(%arg0: i32) -> (i32, i32, i32) {
    %c0_i32 = arith.constant 0 : i32
    %c0_i32_0 = arith.constant 0 : i32
    %c0_i32_1 = arith.constant 0 : i32
    %c0_i32_2 = arith.constant 0 : i32
    return %c0_i32, %c0_i32_0, %c0_i32_1 : i32, i32, i32
  }
  func.func @transform_3(%arg0: i32) -> (i32, i32, i32) {
    %c0_i32 = arith.constant 0 : i32
    %c0_i32_0 = arith.constant 0 : i32
    %c0_i32_1 = arith.constant 0 : i32
    %c0_i32_2 = arith.constant 0 : i32
    return %c0_i32, %c0_i32_0, %c0_i32_1 : i32, i32, i32
  }
  func.func @transform_4(%arg0: i32) -> (i32, i32) {
    %c0_i32 = arith.constant 0 : i32
    %c0_i32_0 = arith.constant 0 : i32
    return %c0_i32, %arg0 : i32, i32
  }
}

</mosaic_0001>

<bundles_post_ra>
// kernel: tpu_custom_call.1
= control target key start
LH: loop header
LB: loop body
LE: loop exit
PB: predicated region body
PF: predicated region fallthrough
CT: control target
= control target key end

     0   :  { %vm57_vm0 = vcmask 64512   ;;  %vm27_vm1 = vcmask 130048   ;;  %s400_s0 = inlined_call_operand.vmem [shape: f32[8,128], index: 0, kind: input, shape index: {}]   ;;  %s401_s1 = inlined_call_operand.vmem [shape: f32[16,128], index: 1, kind: input, shape index: {}]   ;;  %s402_s2 = inlined_call_operand.vmem [shape: f32[3,16,8], index: 2, kind: input, shape index: {}]   ;;  %s403_s3 = inlined_call_operand.vmem [shape: f32[3,16,16], index: 3, kind: input, shape index: {}]   ;;  %s404_s4 = inlined_call_operand.hbm [shape: f32[8,128], index: 4, kind: output, shape index: {}]  }
   0x1   :  { %v20_v0 = vld [vmem:[%s401_s1 + $0x8] sm:$0xff]  ;;  %v19_v1 = vld [vmem:[%s401_s1] sm:$0xff] }
   0x2   :  { %48 = vmatpush.msra.mxu0 %v20_v0  ;;  %v25_v2 = vld [vmem:[%s403_s3] sm:$0xff]  ;;  %v24_v4 = vld [vmem:[%s402_s2 + $0x8] sm:$0xff]  ;;  %120 = vmatpush.msra.mxu2 %v20_v0 }
   0x3   :  { %v18_v3 = vld [vmem:[%s400_s0] sm:$0xff] }
   0x4   :  { %273 = vmatpush.msra.mxu1 %v18_v3 }
   0x5   :  { %9 = vsyncpa [#allocation3], 0  ;;  %49 = vmatpush.msra.mxu0 %v19_v1  ;;  %256 = vmatmul.msk.f32.vlgmr.msra.gmra.mxu1 %vm57_vm0, %v24_v4  ;;  %v26_v5 = vld [vmem:[%s403_s3 + $0x8] sm:$0xff]  ;;  %v23_v6 = vld [vmem:[%s402_s2] sm:$0xff]  ;;  %v21_v13 = vperm.slane %v20_v0, 0  ;;  %s314_s16 = smov [#allocation2]  }
   0x6   :  { %253 = vmatmul.msk.f32.vlgmr.msra.gmra.mxu0 %vm27_vm1, %v25_v2  ;;  %121 = vmatpush.msra.mxu2 %v19_v1  ;;  %v259_v7 = vld [vmem:[%s403_s3 + $0x10] sm:$0xff]  ;;  %v260_v8 = vld [vmem:[%s403_s3 + $0x18] sm:$0xff]  ;;  %v267_v27 = vld [vmem:[%s403_s3 + $0x20] sm:$0xff]  ;;  %s242_s17 = sshll.u32 %s314_s16, 4  ;;  %s243_s17 = int_to_ptr.vmem [resolvable:$true] %s242_s17 }
   0x7   :  { %79 = vmatpush.msrb.mxu0 %v18_v3  ;;  %191 = vmatpush.msrb.mxu1 %v20_v0  ;;  %v22_v14 = vmul.f32 0.5, %v21_v13  ;;  %v257_v24 = vld [vmem:[%s402_s2 + $0x10] sm:$0xff]  ;;  %v258_v25 = vld [vmem:[%s402_s2 + $0x18] sm:$0xff]  ;;  %v268_v31 = vld [vmem:[%s403_s3 + $0x28] sm:$0xff] }
   0x8   :  { %261 = vmatmul.msk.f32.vlgmr.msra.gmra.mxu2 %vm27_vm1, %v259_v7  ;;  %v265_v41 = vld [vmem:[%s402_s2 + $0x20] sm:$0xff]  ;;  %v266_v42 = vld [vmem:[%s402_s2 + $0x28] sm:$0xff]  ;;  %s244_s2 = sshll.u32 %s404_s4, 4  ;;  %s245_s2 = int_to_ptr.hbm [resolvable:$true] %s244_s2 }
   0x9   :  { %192 = vmatpush.msrb.mxu1 %v19_v1 }
   0xd   :  { %269 = vmatmul.msk.f32.vlgmr.msrb.gmra.mxu1 %vm27_vm1, %v267_v27 }
   0xe   :  { %254 = vmatmul.msk.f32.gmra.mxu0 %vm27_vm1, %v26_v5 }
  0x10   :  { %262 = vmatmul.msk.f32.gmra.mxu2 %vm27_vm1, %v260_v8 }
  0x15   :  { %270 = vmatmul.msk.f32.gmra.mxu1 %vm27_vm1, %v268_v31 }
  0x16   :  { %255 = vmatmul.msk.f32.vlgmr.msrb.gmra.mxu0 %vm57_vm0, %v23_v6 }
  0x82   :  { %v84_v10 = vpop.f32.mrf.mxu1 }
  0x83   :  { %v51_v9 = vpop.f32.mrf.mxu0 }
  0x8a   :  { %v194_v43 = vpop.f32.mrf.mxu1 }
  0x8b   :  { %v54_v11 = vpop.f32.mrf.mxu0  ;;  %v123_v26 = vpop.f32.mrf.mxu2 }
  0x8c   :  { %v85_v12 = vadd.f32 %v84_v10, %v54_v11 }
  0x8e   :  { %276 = vtanh.f32 %v85_v12 }
  0x92   :  { %v197_v45 = vpop.f32.mrf.mxu1 }
  0x93   :  { %v81_v18 = vpop.f32.mrf.mxu0  ;;  %v126_v28 = vpop.f32.mrf.mxu2 }
  0x94   :  { %v277_v15 = vpop.eup %276  ;;  %v82_v19 = vadd.f32 %v81_v18, %v51_v9 }
  0x95   :  { %v89_v16 = vmul.f32 %v277_v15, %v22_v14 }
  0x96   :  { %v87_v21 = vmul.f32 %v82_v19, %v21_v13 }
  0x97   :  { %v90_v17 = vmul.f32 1.442695, %v89_v16 }
  0x99   :  { %278 = vpow2.f32 %v90_v17 }
  0x9f   :  { %v279_v20 = vpop.eup %278 }
  0xa0   :  { %v92_v22 = vmul.f32 %v279_v20, %v18_v3 }
  0xa2   :  { %v93_v23 = vadd.f32 %v92_v22, %v87_v21 }
  0xa4   :  { %150 = vmatpush.msrb.mxu2 %v93_v23  ;;  %274 = vmatpush.msra.mxu3 %v93_v23 }
  0xa5   :  { %263 = vmatmul.msk.f32.vlgmr.msrb.gmra.mxu2 %vm57_vm0, %v257_v24  ;;  %264 = vmatmul.msk.f32.vlgmr.msra.gmra.mxu3 %vm57_vm0, %v258_v25 }
 0x128   :  { %v155_v29 = vpop.f32.mrf.mxu3  ;;  %v152_v35 = vpop.f32.mrf.mxu2 }
 0x129   :  { %v156_v30 = vadd.f32 %v155_v29, %v126_v28  ;;  %v153_v36 = vadd.f32 %v152_v35, %v123_v26 }
 0x12b   :  { %280 = vtanh.f32 %v156_v30  ;;  %v158_v38 = vmul.f32 %v153_v36, %v21_v13 }
 0x131   :  { %v281_v32 = vpop.eup %280 }
 0x132   :  { %v160_v33 = vmul.f32 %v281_v32, %v22_v14 }
 0x134   :  { %v161_v34 = vmul.f32 1.442695, %v160_v33 }
 0x136   :  { %282 = vpow2.f32 %v161_v34 }
 0x13c   :  { %v283_v37 = vpop.eup %282 }
 0x13d   :  { %v163_v39 = vmul.f32 %v283_v37, %v93_v23 }
 0x13f   :  { %v164_v40 = vadd.f32 %v163_v39, %v158_v38 }
 0x141   :  { %221 = vmatpush.msrb.mxu3 %v164_v40 }
 0x142   :  { %271 = vmatmul.msk.f32.vlgmr.msrb.gmra.mxu3 %vm57_vm0, %v265_v41 }
 0x14a   :  { %272 = vmatmul.msk.f32.gmra.mxu3 %vm57_vm0, %v266_v42 }
 0x1c5   :  { %v223_v44 = vpop.f32.mrf.mxu3 }
 0x1c6   :  { %v224_v51 = vadd.f32 %v223_v44, %v194_v43 }
 0x1c8   :  { %v229_v53 = vmul.f32 %v224_v51, %v21_v13 }
 0x1cd   :  { %v226_v46 = vpop.f32.mrf.mxu3 }
 0x1ce   :  { %v227_v47 = vadd.f32 %v226_v46, %v197_v45 }
 0x1d0   :  { %284 = vtanh.f32 %v227_v47 }
 0x1d6   :  { %v285_v48 = vpop.eup %284 }
 0x1d7   :  { %v231_v49 = vmul.f32 %v285_v48, %v22_v14 }
 0x1d9   :  { %v232_v50 = vmul.f32 1.442695, %v231_v49 }
 0x1db   :  { %286 = vpow2.f32 %v232_v50 }
 0x1e1   :  { %v287_v52 = vpop.eup %286 }
 0x1e2   :  { %v234_v54 = vmul.f32 %v287_v52, %v164_v40 }
 0x1e4   :  { %v235_v55 = vadd.f32 %v234_v54, %v229_v53 }
 0x1e6   :  { %236 = vst [vmem:[#allocation2] sm:$0xff] %v235_v55 }
 0x1e7   :  { %247 = dma.vmem_to_hbm [thread:$0]  %s243_s17, 128, %s245_s2, [#allocation3]  }
 0x1e8   :  { %312 = dma.done.wait [#allocation3], 128  }
 0x1e9   :  { %313 = vsyncadd [#allocation3], 4294967168 }
 0x1ea   :  { %252 = vsyncpa [#allocation3], 1 }

</bundles_post_ra>
